<compile_context>
chip_gen: v7x
topology: tpu7x:2x2x1
jax: 0.10.0
libtpu: 0.0.40
codegen_flags: <defaults>
</compile_context>

<pallas_src>
import functools
import math

import jax
import jax.numpy as jnp
from jax.experimental import pallas as pl
from jax.experimental.pallas import tpu as pltpu


# ---------------------------------------------------------------------------
# Generation-aware scoped-VMEM budget: ~3/4 of physical VMEM per TensorCore
# (96 MiB on v5e/v6e's 128 MiB, 48 MiB on v7x's 64 MiB).  Falls back to a
# v7x-safe 48 MiB if the hardware query is unavailable.
# ---------------------------------------------------------------------------
@functools.lru_cache(maxsize=None)
def _vmem_limit_bytes():
    try:
        cap = int(pltpu.get_tpu_info().vmem_capacity_bytes)
    except Exception:
        cap = 64 * 1024 * 1024
    return (cap * 3) // 4


def _row_tile(n, cap=256):
    """Second-minor (sublane) tile: full extent if small, else a 512/256/128
    divisor, else a multiple-of-8 tile with a masked trailing partial block
    (padded rows are row-independent and get dropped on store)."""
    if n <= cap:
        return n
    for cand in (512, 256, 128):
        if cand <= cap and n % cand == 0:
            return cand
    return cap


def _red_tile(n, cap=2048):
    """Contraction (K) tile: only tile when it divides evenly — a padded
    partial K block would pollute the accumulator."""
    if n <= cap:
        return n
    for cand in (2048, 1024, 512, 256):
        if cand <= cap and n % cand == 0:
            return cand
    return n


# ---------------------------------------------------------------------------
# Kernel 1: head-major QKV projection
#   out[b, h, s, :] = x[b, s, :] @ W_h + b_h
# Grid = (B, q-tiles, H, K-tiles); K is the innermost reduction axis with an
# f32 VMEM accumulator.  With a single K step (the common case) the x panel's
# block index does not change across the head sweep, so Pallas keeps it
# resident and only the (tk, d_k) weight panel is re-fetched per head.
# ---------------------------------------------------------------------------
def _qkv_proj_kernel(x_ref, w_ref, b_ref, o_ref, acc_ref):
    kk = pl.program_id(3)

    @pl.when(kk == 0)
    def _init():
        acc_ref[...] = jnp.zeros_like(acc_ref)

    acc_ref[...] += jnp.dot(x_ref[...], w_ref[...],
                            preferred_element_type=jnp.float32)

    @pl.when(kk == pl.num_programs(3) - 1)
    def _finalize():
        o_ref[...] = (acc_ref[...] + b_ref[...]).astype(o_ref.dtype)


def _project_heads(x, w_hm, b_hm):
    """x: (B, S, D), w_hm: (H, D, d_k), b_hm: (H, 1, d_k) -> (B, H, S, d_k)."""
    B, S, D = x.shape
    H, _, d_k = w_hm.shape
    tq = _row_tile(S, cap=512)
    tk = _red_tile(D)
    grid = (B, pl.cdiv(S, tq), H, pl.cdiv(D, tk))
    cost = pl.CostEstimate(
        flops=2 * B * S * D * H * d_k,
        transcendentals=0,
        bytes_accessed=4 * (B * S * D + H * D * d_k + B * H * S * d_k),
    )
    return pl.pallas_call(
        _qkv_proj_kernel,
        out_shape=jax.ShapeDtypeStruct((B, H, S, d_k), x.dtype),
        grid_spec=pltpu.PrefetchScalarGridSpec(
            num_scalar_prefetch=0,
            grid=grid,
            in_specs=[
                pl.BlockSpec((pl.Squeezed(), tq, tk),
                             lambda b, qi, h, kk: (b, qi, kk)),
                pl.BlockSpec((pl.Squeezed(), tk, d_k),
                             lambda b, qi, h, kk: (h, kk, 0)),
                pl.BlockSpec((pl.Squeezed(), 1, d_k),
                             lambda b, qi, h, kk: (h, 0, 0)),
            ],
            out_specs=pl.BlockSpec(
                (pl.Squeezed(), pl.Squeezed(), tq, d_k),
                lambda b, qi, h, kk: (b, h, qi, 0)),
            scratch_shapes=[pltpu.VMEM((tq, d_k), jnp.float32)],
        ),
        compiler_params=pltpu.CompilerParams(
            dimension_semantics=("parallel", "parallel", "parallel",
                                 "arbitrary"),
            vmem_limit_bytes=_vmem_limit_bytes(),
        ),
        cost_estimate=cost,
    )(x, w_hm, b_hm)


# ---------------------------------------------------------------------------
# Kernel 2: attention fused with the output projection
# Grid = (B, q-tiles, H); per step it computes one head's softmax weights for
# one query tile, writes them out, and accumulates that head's contribution
# ctx_h @ W_o_h into a lane-dense (tq, D) f32 accumulator (heads = reduction
# axis).  The bias is added and the output stored at the last head.
# ---------------------------------------------------------------------------
def _attention_kernel(q_ref, k_ref, v_ref, wo_ref, bo_ref,
                      out_ref, attn_ref, acc_ref, *, inv_scale):
    h = pl.program_id(2)

    @pl.when(h == 0)
    def _init():
        acc_ref[...] = jnp.zeros_like(acc_ref)

    # scores = (Q / sqrt(d_k)) @ K^T without materializing K^T; the scale is
    # folded into the small (tq, d_k) query tile (tiny live range).
    q = q_ref[...].astype(jnp.float32) * inv_scale
    scores = jax.lax.dot_general(
        q, k_ref[...].astype(jnp.float32),
        (((1,), (1,)), ((), ())),
        preferred_element_type=jnp.float32)                       # (tq, S)

    # Numerically stable softmax along the key axis.  Exact normalization:
    # the weights are a user-visible output (rows must sum to 1).
    m = jnp.max(scores, axis=-1, keepdims=True)
    p = jnp.exp(scores - m)
    weights = p / jnp.sum(p, axis=-1, keepdims=True)
    attn_ref[...] = weights.astype(attn_ref.dtype)

    # Per-head context, then its output-projection contribution:
    #   out = concat_h(ctx_h) @ W_o^T + b_o == sum_h ctx_h @ W_o_h + b_o
    ctx = jnp.dot(weights.astype(v_ref.dtype), v_ref[...],
                  preferred_element_type=jnp.float32)              # (tq, d_k)
    acc_ref[...] += jnp.dot(ctx.astype(wo_ref.dtype), wo_ref[...],
                            preferred_element_type=jnp.float32)    # (tq, D)

    @pl.when(h == pl.num_programs(2) - 1)
    def _finalize():
        out_ref[...] = (acc_ref[...] + bo_ref[...]).astype(out_ref.dtype)

    # Dropout on the attention weights is identity (inference / eval mode).
    # TODO(synk): optional attention-mask path (mask=None here).


def _attention_output(q, k, v, wo_hm, b_o, *, scale):
    """q/k/v: (B, H, S, d_k) head-major; wo_hm: (H, d_k, D); b_o: (1, D).
    Returns (output (B, S, D), attention weights (B, H, S, S))."""
    B, H, S, d_k = q.shape
    D = wo_hm.shape[-1]
    tq = _row_tile(S, cap=256)
    grid = (B, pl.cdiv(S, tq), H)
    kernel = functools.partial(_attention_kernel, inv_scale=1.0 / scale)

    q_spec = pl.BlockSpec((pl.Squeezed(), pl.Squeezed(), tq, d_k),
                          lambda b, qi, h: (b, h, qi, 0))
    kv_spec = pl.BlockSpec((pl.Squeezed(), pl.Squeezed(), S, d_k),
                           lambda b, qi, h: (b, h, 0, 0))
    wo_spec = pl.BlockSpec((pl.Squeezed(), d_k, D), lambda b, qi, h: (h, 0, 0))
    bo_spec = pl.BlockSpec((1, D), lambda b, qi, h: (0, 0))
    out_spec = pl.BlockSpec((pl.Squeezed(), tq, D), lambda b, qi, h: (b, qi, 0))
    attn_spec = pl.BlockSpec((pl.Squeezed(), pl.Squeezed(), tq, S),
                             lambda b, qi, h: (b, h, qi, 0))

    cost = pl.CostEstimate(
        flops=4 * B * H * S * S * d_k + 2 * B * H * S * d_k * D,
        transcendentals=B * H * S * S,
        bytes_accessed=4 * (3 * B * H * S * d_k + H * d_k * D + D
                            + B * S * D + B * H * S * S),
    )
    return pl.pallas_call(
        kernel,
        out_shape=(
            jax.ShapeDtypeStruct((B, S, D), q.dtype),
            jax.ShapeDtypeStruct((B, H, S, S), jnp.float32),
        ),
        grid_spec=pltpu.PrefetchScalarGridSpec(
            num_scalar_prefetch=0,
            grid=grid,
            in_specs=[q_spec, kv_spec, kv_spec, wo_spec, bo_spec],
            out_specs=(out_spec, attn_spec),
            scratch_shapes=[pltpu.VMEM((tq, D), jnp.float32)],
        ),
        compiler_params=pltpu.CompilerParams(
            dimension_semantics=("parallel", "parallel", "arbitrary"),
            vmem_limit_bytes=_vmem_limit_bytes(),
        ),
        cost_estimate=cost,
    )(q, k, v, wo_hm, b_o)


# ---------------------------------------------------------------------------
# MultiHeadAttention forward
# ---------------------------------------------------------------------------
def multi_head_attention(params, query, key, value, num_heads):
    """query/key/value: (B, S, D). Returns (output (B,S,D), attn (B,H,S,S)).

    `params` must come from prepare_params() (head-major weight layouts,
    arranged once outside the jitted forward: no per-step HBM transposes)."""
    B, S, D = query.shape
    assert D % num_heads == 0
    assert params["Wq"].shape[0] == num_heads
    d_k = D // num_heads
    scale = math.sqrt(d_k)

    Q = _project_heads(query, params["Wq"], params["bq"])   # (B, H, S, d_k)
    K = _project_heads(key, params["Wk"], params["bk"])
    V = _project_heads(value, params["Wv"], params["bv"])

    return _attention_output(Q, K, V, params["Wo"], params["bo"], scale=scale)


def init_params(key, d_model):
    """PyTorch-layout params: W_* are (Dout, Din), b_* are (Dout,)."""
    bound = 1.0 / math.sqrt(d_model)
    keys = jax.random.split(key, 8)
    u = lambda k, shape: jax.random.uniform(
        k, shape, dtype=jnp.float32, minval=-bound, maxval=bound)
    return {
        "W_q": u(keys[0], (d_model, d_model)), "b_q": u(keys[1], (d_model,)),
        "W_k": u(keys[2], (d_model, d_model)), "b_k": u(keys[3], (d_model,)),
        "W_v": u(keys[4], (d_model, d_model)), "b_v": u(keys[5], (d_model,)),
        "W_o": u(keys[6], (d_model, d_model)), "b_o": u(keys[7], (d_model,)),
    }


def prepare_params(params, num_heads):
    """One-time (outside jit) re-layout of the PyTorch weights into the
    kernel-friendly head-major layouts:
      W_q/k/v (D, D) -> (H, D, d_k)   per-head column panels of W^T
      b_q/k/v (D,)   -> (H, 1, d_k)
      W_o     (D, D) -> (H, d_k, D)   per-head row panels of W_o^T
      b_o     (D,)   -> (1, D)
    """
    D = params["W_q"].shape[0]
    d_k = D // num_heads

    def w_heads(w):          # (Dout, Din) -> (H, Din, d_k)
        return jnp.transpose(w.reshape(num_heads, d_k, D), (0, 2, 1))

    def b_heads(b):
        return b.reshape(num_heads, 1, d_k)

    return {
        "Wq": w_heads(params["W_q"]), "bq": b_heads(params["b_q"]),
        "Wk": w_heads(params["W_k"]), "bk": b_heads(params["b_k"]),
        "Wv": w_heads(params["W_v"]), "bv": b_heads(params["b_v"]),
        "Wo": jnp.transpose(params["W_o"], (1, 0)).reshape(num_heads, d_k, D),
        "bo": params["b_o"].reshape(1, D),
    }


if __name__ == "__main__":
    B, S, D, H = 2, 8, 32, 4

    root = jax.random.PRNGKey(0)
    k_params, k_q, k_k, k_v = jax.random.split(root, 4)
    params = init_params(k_params, D)
    kernel_params = prepare_params(params, H)   # one-time re-layout

    query = jax.random.normal(k_q, (B, S, D), dtype=jnp.float32)
    key_in = jax.random.normal(k_k, (B, S, D), dtype=jnp.float32)
    value = jax.random.normal(k_v, (B, S, D), dtype=jnp.float32)

    mha = jax.jit(functools.partial(multi_head_attention, num_heads=H))
    output, attn_weights = mha(kernel_params, query, key_in, value)
    jax.block_until_ready((output, attn_weights))

    # lightweight sanity check against a pure-JAX reference (PyTorch layout)
    def ref(p, q, k, v):
        d_k = D // H

        def lin(x, w, b):
            return x @ w.T + b

        def heads(x, w, b):
            y = lin(x.reshape(B * S, D), w, b).reshape(B, S, H, d_k)
            return jnp.transpose(y, (0, 2, 1, 3))

        Q = heads(q, p["W_q"], p["b_q"])
        K = heads(k, p["W_k"], p["b_k"])
        V = heads(v, p["W_v"], p["b_v"])
        sc = jnp.einsum("bhqd,bhkd->bhqk", Q, K) / math.sqrt(d_k)
        w = jax.nn.softmax(sc, axis=-1)
        ctx = jnp.einsum("bhqk,bhkd->bhqd", w, V)
        ctx = jnp.transpose(ctx, (0, 2, 1, 3)).reshape(B * S, D)
        return lin(ctx, p["W_o"], p["b_o"]).reshape(B, S, D), w

    ref_out, ref_w = ref(params, query, key_in, value)
    assert output.shape == (B, S, D)
    assert attn_weights.shape == (B, H, S, S)
    # tolerance covers MXU f32 matmul pass behavior at default precision;
    # observed error is far below this (softmax normalization is exact).
    assert jnp.allclose(output, ref_out, atol=1e-2, rtol=1e-2)
    assert jnp.allclose(attn_weights, ref_w, atol=1e-2, rtol=1e-2)

    print("KERNEL_OK")
</pallas_src>

<mosaic_0001>
module attributes {stable_mosaic.version = 11 : i64} {
  func.func @_attention_kernel(%arg0: i32, %arg1: i32, %arg2: i32, %arg3: memref<1x1x8x8xf32, #tpu.memory_space<vmem>>, %arg4: memref<1x1x8x8xf32, #tpu.memory_space<vmem>>, %arg5: memref<1x1x8x8xf32, #tpu.memory_space<vmem>>, %arg6: memref<1x8x32xf32, #tpu.memory_space<vmem>>, %arg7: memref<1x32xf32, #tpu.memory_space<vmem>>, %arg8: memref<1x8x32xf32, #tpu.memory_space<vmem>>, %arg9: memref<1x1x8x8xf32, #tpu.memory_space<vmem>>, %arg10: memref<8x32xf32, #tpu.memory_space<vmem>>) attributes {dimension_semantics = [#tpu.dimension_semantics<parallel>, #tpu.dimension_semantics<parallel>, #tpu.dimension_semantics<arbitrary>], iteration_bounds = array<i64: 2, 1, 4>, scalar_prefetch = 0 : i64, scratch_operands = 1 : i64, tpu.core_type = #tpu.core_type<tc>, window_params = [{transform_indices = @transform_0, window_bounds = array<i64: 1, 1, 8, 8>}, {transform_indices = @transform_1, window_bounds = array<i64: 1, 1, 8, 8>}, {transform_indices = @transform_2, window_bounds = array<i64: 1, 1, 8, 8>}, {transform_indices = @transform_3, window_bounds = array<i64: 1, 8, 32>}, {pipeline_mode = #tpu.pipeline_mode<synchronous>, transform_indices = @transform_4, window_bounds = array<i64: 1, 32>}, {transform_indices = @transform_5, window_bounds = array<i64: 1, 8, 32>}, {transform_indices = @transform_6, window_bounds = array<i64: 1, 1, 8, 8>}]} {
    %c0_i32 = arith.constant 0 : i32
    %0 = arith.cmpi eq, %arg2, %c0_i32 : i32
    %1 = arith.extui %0 : i1 to i32
    %c0_i32_0 = arith.constant 0 : i32
    %2 = arith.cmpi ne, %1, %c0_i32_0 : i32
    scf.if %2 {
      %cst_29 = arith.constant 0.000000e+00 : f32
      %34 = vector.broadcast %cst_29 : f32 to vector<8x32xf32>
      %c0_30 = arith.constant 0 : index
      %c0_31 = arith.constant 0 : index
      %35 = vector.load %arg10[%c0_30, %c0_31] : memref<8x32xf32, #tpu.memory_space<vmem>>, vector<8x32xf32>
      tpu.vector_store %arg10[%c0_30, %c0_31], %34 {strides = array<i32>} : memref<8x32xf32, #tpu.memory_space<vmem>>, vector<8x32xf32>,
    } else {
    }
    %c0 = arith.constant 0 : index
    %c0_1 = arith.constant 0 : index
    %c0_2 = arith.constant 0 : index
    %c0_3 = arith.constant 0 : index
    %3 = vector.load %arg3[%c0, %c0_1, %c0_2, %c0_3] : memref<1x1x8x8xf32, #tpu.memory_space<vmem>>, vector<1x1x8x8xf32>
    %4 = vector.shape_cast %3 : vector<1x1x8x8xf32> to vector<8x8xf32>
    %cst = arith.constant 0.353553385 : f32
    %5 = vector.broadcast %cst : f32 to vector<8x8xf32>
    %6 = arith.mulf %4, %5 : vector<8x8xf32>
    %c0_4 = arith.constant 0 : index
    %c0_5 = arith.constant 0 : index
    %c0_6 = arith.constant 0 : index
    %c0_7 = arith.constant 0 : index
    %7 = vector.load %arg4[%c0_4, %c0_5, %c0_6, %c0_7] : memref<1x1x8x8xf32, #tpu.memory_space<vmem>>, vector<1x1x8x8xf32>
    %8 = vector.shape_cast %7 : vector<1x1x8x8xf32> to vector<8x8xf32>
    %cst_8 = arith.constant dense<0.000000e+00> : vector<8x8xf32>
    %9 = tpu.matmul %6, %8, %cst_8 {dimension_numbers = #tpu.dot_dimension_numbers<[1], [1], [0], [0], [0, 0, 1, 0], [], []>} : vector<8x8xf32>, vector<8x8xf32>, vector<8x8xf32> -> vector<8x8xf32>
    %cst_9 = arith.constant dense<0xFF800000> : vector<8xf32>
    %10 = vector.multi_reduction <maximumf>, %9, %cst_9 [1] : vector<8x8xf32> to vector<8xf32>
    %11 = vector.shape_cast %10 : vector<8xf32> to vector<8x1xf32>
    %12 = vector.broadcast %11 : vector<8x1xf32> to vector<8x8xf32>
    %13 = arith.subf %9, %12 : vector<8x8xf32>
    %14 = math.exp %13 : vector<8x8xf32>
    %cst_10 = arith.constant dense<0.000000e+00> : vector<8xf32>
    %15 = vector.multi_reduction <add>, %14, %cst_10 [1] : vector<8x8xf32> to vector<8xf32>
    %16 = vector.shape_cast %15 : vector<8xf32> to vector<8x1xf32>
    %17 = vector.broadcast %16 : vector<8x1xf32> to vector<8x8xf32>
    %18 = arith.divf %14, %17 : vector<8x8xf32>
    %c0_11 = arith.constant 0 : index
    %c0_12 = arith.constant 0 : index
    %c0_13 = arith.constant 0 : index
    %c0_14 = arith.constant 0 : index
    %19 = vector.load %arg9[%c0_11, %c0_12, %c0_13, %c0_14] : memref<1x1x8x8xf32, #tpu.memory_space<vmem>>, vector<1x1x8x8xf32>
    %20 = vector.shape_cast %19 : vector<1x1x8x8xf32> to vector<8x8xf32>
    %21 = vector.shape_cast %18 : vector<8x8xf32> to vector<1x1x8x8xf32>
    tpu.vector_store %arg9[%c0_11, %c0_12, %c0_13, %c0_14], %21 {strides = array<i32>} : memref<1x1x8x8xf32, #tpu.memory_space<vmem>>, vector<1x1x8x8xf32>,
    %c0_15 = arith.constant 0 : index
    %c0_16 = arith.constant 0 : index
    %c0_17 = arith.constant 0 : index
    %c0_18 = arith.constant 0 : index
    %22 = vector.load %arg5[%c0_15, %c0_16, %c0_17, %c0_18] : memref<1x1x8x8xf32, #tpu.memory_space<vmem>>, vector<1x1x8x8xf32>
    %23 = vector.shape_cast %22 : vector<1x1x8x8xf32> to vector<8x8xf32>
    %cst_19 = arith.constant dense<0.000000e+00> : vector<8x8xf32>
    %24 = tpu.matmul %18, %23, %cst_19 {dimension_numbers = #tpu.dot_dimension_numbers<[1], [0], [0], [1], [0, 0, 1, 1], [], []>} : vector<8x8xf32>, vector<8x8xf32>, vector<8x8xf32> -> vector<8x8xf32>
    %c0_20 = arith.constant 0 : index
    %c0_21 = arith.constant 0 : index
    %25 = vector.load %arg10[%c0_20, %c0_21] : memref<8x32xf32, #tpu.memory_space<vmem>>, vector<8x32xf32>
    %c0_22 = arith.constant 0 : index
    %c0_23 = arith.constant 0 : index
    %c0_24 = arith.constant 0 : index
    %26 = vector.load %arg6[%c0_22, %c0_23, %c0_24] : memref<1x8x32xf32, #tpu.memory_space<vmem>>, vector<1x8x32xf32>
    %27 = vector.shape_cast %26 : vector<1x8x32xf32> to vector<8x32xf32>
    %cst_25 = arith.constant dense<0.000000e+00> : vector<8x32xf32>
    %28 = tpu.matmul %24, %27, %cst_25 {dimension_numbers = #tpu.dot_dimension_numbers<[1], [0], [0], [1], [0, 0, 1, 1], [], []>} : vector<8x8xf32>, vector<8x32xf32>, vector<8x32xf32> -> vector<8x32xf32>
    %29 = arith.addf %25, %28 : vector<8x32xf32>
    %c0_26 = arith.constant 0 : index
    %c0_27 = arith.constant 0 : index
    %30 = vector.load %arg10[%c0_26, %c0_27] : memref<8x32xf32, #tpu.memory_space<vmem>>, vector<8x32xf32>
    tpu.vector_store %arg10[%c0_26, %c0_27], %29 {strides = array<i32>} : memref<8x32xf32, #tpu.memory_space<vmem>>, vector<8x32xf32>,
    %c3_i32 = arith.constant 3 : i32
    %31 = arith.cmpi eq, %arg2, %c3_i32 : i32
    %32 = arith.extui %31 : i1 to i32
    %c0_i32_28 = arith.constant 0 : i32
    %33 = arith.cmpi ne, %32, %c0_i32_28 : i32
    scf.if %33 {
      %c0_29 = arith.constant 0 : index
      %c0_30 = arith.constant 0 : index
      %34 = vector.load %arg10[%c0_29, %c0_30] : memref<8x32xf32, #tpu.memory_space<vmem>>, vector<8x32xf32>
      %c0_31 = arith.constant 0 : index
      %c0_32 = arith.constant 0 : index
      %35 = vector.load %arg7[%c0_31, %c0_32] : memref<1x32xf32, #tpu.memory_space<vmem>>, vector<1x32xf32>
      %36 = vector.broadcast %35 : vector<1x32xf32> to vector<8x32xf32>
      %37 = arith.addf %34, %36 : vector<8x32xf32>
      %c0_33 = arith.constant 0 : index
      %c0_34 = arith.constant 0 : index
      %c0_35 = arith.constant 0 : index
      %38 = vector.load %arg8[%c0_33, %c0_34, %c0_35] : memref<1x8x32xf32, #tpu.memory_space<vmem>>, vector<1x8x32xf32>
      %39 = vector.shape_cast %38 : vector<1x8x32xf32> to vector<8x32xf32>
      %40 = vector.shape_cast %37 : vector<8x32xf32> to vector<1x8x32xf32>
      tpu.vector_store %arg8[%c0_33, %c0_34, %c0_35], %40 {strides = array<i32>} : memref<1x8x32xf32, #tpu.memory_space<vmem>>, vector<1x8x32xf32>,
    } else {
    }
    return
  }
  func.func @transform_0(%arg0: i32, %arg1: i32, %arg2: i32) -> (i32, i32, i32, i32) {
    %c0_i32 = arith.constant 0 : i32
    %c0_i32_0 = arith.constant 0 : i32
    return %arg0, %arg2, %arg1, %c0_i32 : i32, i32, i32, i32
  }
  func.func @transform_1(%arg0: i32, %arg1: i32, %arg2: i32) -> (i32, i32, i32, i32) {
    %c0_i32 = arith.constant 0 : i32
    %c0_i32_0 = arith.constant 0 : i32
    %c0_i32_1 = arith.constant 0 : i32
    return %arg0, %arg2, %c0_i32, %c0_i32_0 : i32, i32, i32, i32
  }
  func.func @transform_2(%arg0: i32, %arg1: i32, %arg2: i32) -> (i32, i32, i32, i32) {
    %c0_i32 = arith.constant 0 : i32
    %c0_i32_0 = arith.constant 0 : i32
    %c0_i32_1 = arith.constant 0 : i32
    return %arg0, %arg2, %c0_i32, %c0_i32_0 : i32, i32, i32, i32
  }
  func.func @transform_3(%arg0: i32, %arg1: i32, %arg2: i32) -> (i32, i32, i32) {
    %c0_i32 = arith.constant 0 : i32
    %c0_i32_0 = arith.constant 0 : i32
    %c0_i32_1 = arith.constant 0 : i32
    return %arg2, %c0_i32, %c0_i32_0 : i32, i32, i32
  }
  func.func @transform_4(%arg0: i32, %arg1: i32, %arg2: i32) -> (i32, i32) {
    %c0_i32 = arith.constant 0 : i32
    %c0_i32_0 = arith.constant 0 : i32
    %c0_i32_1 = arith.constant 0 : i32
    return %c0_i32, %c0_i32_0 : i32, i32
  }
  func.func @transform_5(%arg0: i32, %arg1: i32, %arg2: i32) -> (i32, i32, i32) {
    %c0_i32 = arith.constant 0 : i32
    %c0_i32_0 = arith.constant 0 : i32
    return %arg0, %arg1, %c0_i32 : i32, i32, i32
  }
  func.func @transform_6(%arg0: i32, %arg1: i32, %arg2: i32) -> (i32, i32, i32, i32) {
    %c0_i32 = arith.constant 0 : i32
    %c0_i32_0 = arith.constant 0 : i32
    return %arg0, %arg2, %arg1, %c0_i32 : i32, i32, i32, i32
  }
}

module attributes {stable_mosaic.version = 11 : i64} {
  func.func @_qkv_proj_kernel(%arg0: i32, %arg1: i32, %arg2: i32, %arg3: i32, %arg4: memref<1x8x32xf32, #tpu.memory_space<vmem>>, %arg5: memref<1x32x8xf32, #tpu.memory_space<vmem>>, %arg6: memref<1x1x8xf32, #tpu.memory_space<vmem>>, %arg7: memref<1x1x8x8xf32, #tpu.memory_space<vmem>>, %arg8: memref<8x8xf32, #tpu.memory_space<vmem>>) attributes {dimension_semantics = [#tpu.dimension_semantics<parallel>, #tpu.dimension_semantics<parallel>, #tpu.dimension_semantics<parallel>, #tpu.dimension_semantics<arbitrary>], iteration_bounds = array<i64: 2, 1, 4, 1>, scalar_prefetch = 0 : i64, scratch_operands = 1 : i64, tpu.core_type = #tpu.core_type<tc>, window_params = [{transform_indices = @transform_0, window_bounds = array<i64: 1, 8, 32>}, {transform_indices = @transform_1, window_bounds = array<i64: 1, 32, 8>}, {transform_indices = @transform_2, window_bounds = array<i64: 1, 1, 8>}, {transform_indices = @transform_3, window_bounds = array<i64: 1, 1, 8, 8>}]} {
    %c0_i32 = arith.constant 0 : i32
    %0 = arith.cmpi eq, %arg3, %c0_i32 : i32
    %1 = arith.extui %0 : i1 to i32
    %c0_i32_0 = arith.constant 0 : i32
    %2 = arith.cmpi ne, %1, %c0_i32_0 : i32
    scf.if %2 {
      %cst_12 = arith.constant 0.000000e+00 : f32
      %14 = vector.broadcast %cst_12 : f32 to vector<8x8xf32>
      %c0_13 = arith.constant 0 : index
      %c0_14 = arith.constant 0 : index
      %15 = vector.load %arg8[%c0_13, %c0_14] : memref<8x8xf32, #tpu.memory_space<vmem>>, vector<8x8xf32>
      tpu.vector_store %arg8[%c0_13, %c0_14], %14 {strides = array<i32>} : memref<8x8xf32, #tpu.memory_space<vmem>>, vector<8x8xf32>,
    } else {
    }
    %c0 = arith.constant 0 : index
    %c0_1 = arith.constant 0 : index
    %3 = vector.load %arg8[%c0, %c0_1] : memref<8x8xf32, #tpu.memory_space<vmem>>, vector<8x8xf32>
    %c0_2 = arith.constant 0 : index
    %c0_3 = arith.constant 0 : index
    %c0_4 = arith.constant 0 : index
    %4 = vector.load %arg4[%c0_2, %c0_3, %c0_4] : memref<1x8x32xf32, #tpu.memory_space<vmem>>, vector<1x8x32xf32>
    %5 = vector.shape_cast %4 : vector<1x8x32xf32> to vector<8x32xf32>
    %c0_5 = arith.constant 0 : index
    %c0_6 = arith.constant 0 : index
    %c0_7 = arith.constant 0 : index
    %6 = vector.load %arg5[%c0_5, %c0_6, %c0_7] : memref<1x32x8xf32, #tpu.memory_space<vmem>>, vector<1x32x8xf32>
    %7 = vector.shape_cast %6 : vector<1x32x8xf32> to vector<32x8xf32>
    %cst = arith.constant dense<0.000000e+00> : vector<8x8xf32>
    %8 = tpu.matmul %5, %7, %cst {dimension_numbers = #tpu.dot_dimension_numbers<[1], [0], [0], [1], [0, 0, 1, 1], [], []>} : vector<8x32xf32>, vector<32x8xf32>, vector<8x8xf32> -> vector<8x8xf32>
    %9 = arith.addf %3, %8 : vector<8x8xf32>
    %c0_8 = arith.constant 0 : index
    %c0_9 = arith.constant 0 : index
    %10 = vector.load %arg8[%c0_8, %c0_9] : memref<8x8xf32, #tpu.memory_space<vmem>>, vector<8x8xf32>
    tpu.vector_store %arg8[%c0_8, %c0_9], %9 {strides = array<i32>} : memref<8x8xf32, #tpu.memory_space<vmem>>, vector<8x8xf32>,
    %c0_i32_10 = arith.constant 0 : i32
    %11 = arith.cmpi eq, %arg3, %c0_i32_10 : i32
    %12 = arith.extui %11 : i1 to i32
    %c0_i32_11 = arith.constant 0 : i32
    %13 = arith.cmpi ne, %12, %c0_i32_11 : i32
    scf.if %13 {
      %c0_12 = arith.constant 0 : index
      %c0_13 = arith.constant 0 : index
      %14 = vector.load %arg8[%c0_12, %c0_13] : memref<8x8xf32, #tpu.memory_space<vmem>>, vector<8x8xf32>
      %c0_14 = arith.constant 0 : index
      %c0_15 = arith.constant 0 : index
      %c0_16 = arith.constant 0 : index
      %15 = vector.load %arg6[%c0_14, %c0_15, %c0_16] : memref<1x1x8xf32, #tpu.memory_space<vmem>>, vector<1x1x8xf32>
      %16 = vector.shape_cast %15 : vector<1x1x8xf32> to vector<1x8xf32>
      %17 = vector.broadcast %16 : vector<1x8xf32> to vector<8x8xf32>
      %18 = arith.addf %14, %17 : vector<8x8xf32>
      %c0_17 = arith.constant 0 : index
      %c0_18 = arith.constant 0 : index
      %c0_19 = arith.constant 0 : index
      %c0_20 = arith.constant 0 : index
      %19 = vector.load %arg7[%c0_17, %c0_18, %c0_19, %c0_20] : memref<1x1x8x8xf32, #tpu.memory_space<vmem>>, vector<1x1x8x8xf32>
      %20 = vector.shape_cast %19 : vector<1x1x8x8xf32> to vector<8x8xf32>
      %21 = vector.shape_cast %18 : vector<8x8xf32> to vector<1x1x8x8xf32>
      tpu.vector_store %arg7[%c0_17, %c0_18, %c0_19, %c0_20], %21 {strides = array<i32>} : memref<1x1x8x8xf32, #tpu.memory_space<vmem>>, vector<1x1x8x8xf32>,
    } else {
    }
    return
  }
  func.func @transform_0(%arg0: i32, %arg1: i32, %arg2: i32, %arg3: i32) -> (i32, i32, i32) {
    %c0_i32 = arith.constant 0 : i32
    return %arg0, %arg1, %arg3 : i32, i32, i32
  }
  func.func @transform_1(%arg0: i32, %arg1: i32, %arg2: i32, %arg3: i32) -> (i32, i32, i32) {
    %c0_i32 = arith.constant 0 : i32
    %c0_i32_0 = arith.constant 0 : i32
    return %arg2, %arg3, %c0_i32 : i32, i32, i32
  }
  func.func @transform_2(%arg0: i32, %arg1: i32, %arg2: i32, %arg3: i32) -> (i32, i32, i32) {
    %c0_i32 = arith.constant 0 : i32
    %c0_i32_0 = arith.constant 0 : i32
    %c0_i32_1 = arith.constant 0 : i32
    return %arg2, %c0_i32, %c0_i32_0 : i32, i32, i32
  }
  func.func @transform_3(%arg0: i32, %arg1: i32, %arg2: i32, %arg3: i32) -> (i32, i32, i32, i32) {
    %c0_i32 = arith.constant 0 : i32
    %c0_i32_0 = arith.constant 0 : i32
    return %arg0, %arg2, %arg1, %c0_i32 : i32, i32, i32, i32
  }
}

</mosaic_0001>

<bundles_post_ra>
// kernel: multi_head_attention.7
= control target key start
LH: loop header
LB: loop body
LE: loop exit
PB: predicated region body
PF: predicated region fallthrough
CT: control target
= control target key end

     0   :  { %12 = vsyncpa [#allocation4], 0  ;;  %s1473_s0 = inlined_call_operand.vmem [shape: f32[2,4,8,8], index: 0, kind: input, shape index: {}]   ;;  %s1474_s1 = inlined_call_operand.vmem [shape: f32[2,4,8,8], index: 1, kind: input, shape index: {}]   ;;  %s1475_s2 = inlined_call_operand.vmem [shape: f32[2,4,8,8], index: 2, kind: input, shape index: {}]   ;;  %s1476_s3 = inlined_call_operand.vmem [shape: f32[4,8,32], index: 3, kind: input, shape index: {}]   ;;  %s1477_s4 = inlined_call_operand.vmem [shape: f32[1,32], index: 4, kind: input, shape index: {}]   ;;  %s1478_s5 = inlined_call_operand.hbm [shape: f32[2,8,32], index: 5, kind: output, shape index: {0}]   ;;  %s1479_s6 = inlined_call_operand.hbm [shape: f32[2,4,8,8], index: 6, kind: output, shape index: {1}]  }
   0x1   :  { %14 = vsyncpa [#allocation4 + $0x1], 0 }
   0x2   :  { %15 = vsyncpa [#allocation6], 0 }
   0x3   :  { %17 = vsyncpa [#allocation6 + $0x1], 0  ;;  %s1201_s21 = smov 0   ;;  %s1203_s22 = smov 0  }
   0x4   :  { %s1205_s23 = smov 0   ;;  %s1207_s24 = smov 0  }
   0x5   :  { %s1209_s25 = smov 0   ;;  %s1211_s26 = smov 0  }
   0x6   :  { %s1213_s27 = smov 0   ;;  %s1215_s28 = smov 0  }
   0x7   :  { %s1217_s29 = smov 0   ;;  %s1219_s30 = smov 0  }
   0x8   :  { %s1221_s7 = smov 0  }
   0x9 LB: > { %1494 = sst [smem:[#allocation9_spill]] %s1119_s21  ;;  %s853_s8 = sadd.s32 4294967295, %s1159_s7   ;;  %s1159_s7 = sphi %s1221_s7, %s23_s7   ;;  %s1155_s30 = sphi %s1219_s30, %s1528_s30   ;;  %s1151_s29 = sphi %s1217_s29, %s1527_s29   ;;  %s1147_s28 = sphi %s1215_s28, %s1526_s28   ;;  %s1143_s27 = sphi %s1213_s27, %s1525_s27   ;;  %s1139_s26 = sphi %s1211_s26, %s1524_s26   ;;  %s1135_s25 = sphi %s1209_s25, %s1532_s25   ;;  %s1131_s24 = sphi %s1207_s24, %s1531_s24   ;;  %s1127_s23 = sphi %s1205_s23, %s1522_s23   ;;  %s1123_s22 = sphi %s1203_s22, %s1530_s22   ;;  %s1119_s21 = sphi %s1201_s21, %s1529_s21  }
   0xa   : > { %1495 = sst [smem:[#allocation10_spill]] %s1127_s23  ;;  %s854_s9 = sadd.s32 4294967294, %s1159_s7  }
   0xb   : > { %1496 = sst [smem:[#allocation11_spill]] %s1131_s24  ;;  %s35_s10 = sadd.s32 1, %s1151_s29 }
   0xc   : > { %1497 = sst [smem:[#allocation12_spill]] %s1139_s26  ;;  %s42_s11 = sadd.s32 1, %s1155_s30 }
   0xd   : > { %1498 = sst [smem:[#allocation13_spill]] %s1151_s29  ;;  %p36_p0 = scmp.ge.s32.totalorder %s35_s10, 4 }
   0xe   : > { %1499 = sst [smem:[#allocation14_spill]] %s1155_s30  ;;  %s184_s12 = sadd.s32 1, %s1139_s26 }
   0xf   : > { %1500 = sst [smem:[#allocation15_spill]] %s1159_s7  ;;  %p194_p1 = scmp.ne.s32.totalorder %s1139_s26, %s1135_s25 }
  0x10   : > { %p1263_p2 = scmp.eq.s32.totalorder %s853_s8, 7  ;;  %s1534_s10 = smov (%p36_p0, %s35_s10), 0 }
  0x11   : > { %1502 = sst [smem:[#allocation16_spill]] %s1534_s10  ;;  %s1536_s11 = smov (!%p36_p0, %s42_s11), %s1155_s30 }
  0x12   : > { %p1272_p3 = por %p1263_p2, %p194_p1  ;;  %p200_p4 = scmp.ne.s32.totalorder %s1135_s25, %s1131_s24 }
  0x13   : > { %p44_p5 = scmp.ge.s32.totalorder %s1536_s11, 2  ;;  %p1278_p6 = scmp.eq.s32.totalorder %s854_s9, 7 }
  0x14   : > { %s208_s16 = ssub.s32 %s1151_s29, %s1534_s10  ;;  %s214_s17 = sadd.s32 1, %s1127_s23 }
  0x15   : > { %s1538_s11 = smov (%p44_p5, %s1536_s11), 0  ;;  %p1289_p7 = por %p1278_p6, %p200_p4 }
  0x16   : > { %1505 = sst [smem:[#allocation17_spill]] %s1538_s11  ;;  %p224_p8 = scmp.ne.s32.totalorder %s1127_s23, %s1123_s22 }
  0x17   : > { %s1506_s18 = scalar_select %p1289_p7, 1, 0 }
  0x18   : > { %s179_s19 = ssub.s32 %s1155_s30, %s1538_s11  ;;  %p230_p9 = scmp.ne.s32.totalorder %s1123_s22, %s1119_s21 }
  0x19   : > { %1507 = sst [smem:[#allocation18_spill]] %s1506_s18  ;;  %p182_p10 = scmp.eq.s32.totalorder %s179_s19, 0 }
  0x1a   : > { %s209_s20 = sor.u32 %s208_s16, %s179_s19  ;;  %p1301_p12 = por %p224_p8, %p1263_p2 }
  0x1b   : > { %p212_p11 = scmp.eq.s32.totalorder %s209_s20, 0  ;;  %p1313_p13 = por %p230_p9, %p1278_p6 }
  0x1c   : > { %s1306_s9 = scalar_select %p182_p10, %s1139_s26, %s184_s12  }
  0x1d   : > { %s1309_s10 = scalar_select %p212_p11, %s1127_s23, %s214_s17  }
  0x1e   : > { %1509 = sst [smem:[#allocation19_spill]] %s1306_s9  ;;  %p857_p0 = scmp.ge.s32.totalorder %s1159_s7, 1 }
  0x1f   : > { %1510 = sst [smem:[#allocation20_spill]] %s1309_s10  ;;  %p295_p1 = scmp.lt.s32.totalorder %s1159_s7, 9 }
  0x20   : > { %s1511_s29 = scalar_select %p1313_p13, 1, 0 }
  0x21   : > { %p296_p4 = pnand %p857_p0, %p295_p1 }
  0x22   : > { %1512 = sst [smem:[#allocation21_spill]] %s1511_s29  ;;  %s1485_s12 = sand.u32 (!%p296_p4), 1, %s1135_s25  }
  0x23   : > { %299 = sbr.rel (%p296_p4) target bundleno = 1070 (0x42e), region = 40  ;;  %s1486_s13 = sand.u32 (!%p296_p4), 1, %s1123_s22  }
  0x24   : > { %s1323_s15 = sshll.u32 (!%p296_p4), %s1485_s12, 3  ;;  %s1327_s16 = sshll.u32 (!%p296_p4), %s1486_s13, 3 }
  0x25   : > { %p356_p2 = scmp.lt.s32.totalorder (!%p296_p4), %s1147_s28, 1  ;;  %p358_p5 = scmp.lt.s32.totalorder (!%p296_p4), %s1143_s27, 3 }
  0x26   : > { %s348_s24 = scalar_lea.vmem (!%p296_p4), [#allocation3], %s1323_s15  ;;  %s355_s7 = scalar_lea.vmem (!%p296_p4), [#allocation5], %s1327_s16 }
  0x27   : > { %p867_p6 = scmp.ne.s32.totalorder (!%p296_p4), %s1143_s27, 0 }
  0x2a   : > { %s357_s17 = scalar_select %p356_p2, %s1147_s28, 1 }
  0x2b   : > { %s359_s19 = scalar_select %p358_p5, %s1143_s27, 3 }
  0x2c   : > { %s860_s20 = sshll.u32 %s357_s17, 2  ;;  %390 = sbr.rel (%p867_p6) target bundleno = 51 (0x33), region = 44  ;;  %vm391_vm0 = vcmask (!%p867_p6), 261120   ;;  %v1161_v0 = vmov (!%p867_p6), 0.0  }
  0x2d   : > { %s364_s11 = sadd.s32 %s860_s20, %s359_s19  ;;  %s866_s30 = sshll.u32 %s359_s19, 3  ;;  %392 = vst.msk [vmem:[#allocation2] sm:$0xff] (!%p867_p6), %vm391_vm0, %v1161_v0 }
  0x2e   : > { %s1333_s9 = sshll.u32 %s364_s11, 3  ;;  %s1338_s12 = scalar_lea.vmem %s1476_s3, %s866_s30 }
  0x2f   : > { %s366_s29 = scalar_lea.vmem %s1473_s0, %s1333_s9  ;;  %s374_s17 = scalar_lea.vmem %s1474_s1, %s1333_s9 }
  0x30   : > { %s382_s11 = scalar_lea.vmem %s1475_s2, %s1333_s9 }
  0x33 PF: > { %v395_v1 = vld [vmem:[%s374_s17] sm:$0xff]  ;;  %vm396_vm1 = vcmask 64512   ;;  %v1162_v3 = vmov 0.0   ;;  %vm1163_vm2 = vmmov 0   ;;  %vm635_vm3 = vcmask 261120   ;;  %p872_p8 = scmp.ne.s32.totalorder %s1143_s27, 3 }
  0x34   : > { %v393_v2 = vld [vmem:[%s366_s29] sm:$0xff]  ;;  %887 = vmatprep.subr.mxu0 %v1162_v3  ;;  %889 = vmatprep.mubr.msk.f32.mxu0 %vm1163_vm2, %v1162_v3 }
  0x35   : > { %v394_v4 = vmul.f32 0.35355338, %v393_v2  ;;  %888 = vmatpush3.xpose.msk.msra.mxu0 %vm396_vm1, %v395_v1  ;;  %892 = vmatprep.subr.mxu1 %v1162_v3  ;;  %v485_v13 = vld [vmem:[%s382_s11] sm:$0xff] }
  0x36   : > { %894 = vmatprep.mubr.msk.f32.mxu1 %vm1163_vm2, %v1162_v3  ;;  %893 = vmatpush3.msra.mxu1 %v485_v13  ;;  %v560_v17 = vld [vmem:[%s1338_s12] sm:$0xff] }
  0x37   : > { %897 = vmatprep.subr.mxu1 %v1162_v3  ;;  %v559_v20 = vld [vmem:[#allocation2] sm:$0xff] }
  0x38   : > { %890 = vmatmul.mubr.msk.f32.vlgmr.msra.gmra.mrb[0].mxu0 %vm396_vm1, %v394_v4  ;;  %v873_v25 = vld [vmem:[%s1477_s4] ss:$0 sm:$0xff] (!%p872_p8) }
 0x10b   : > { %v469_v5 = vpop.f32.mrb[0].mxu0 }
 0x10c   : > { %v891_v6 = vpop.f32.mrb[1].mxu0  ;;  %v473_v7 = vsel %vm396_vm1, %v469_v5, -inf }
 0x10d   : > { %474 = vmax.xlane.f32.xlu0 %v473_v7 }
 0x19a   : > { %v475_v8 = vpop.xlane.xlu0 %474 }
 0x19b   : > { %v476_v9 = vsub.f32 %v469_v5, %v475_v8 }
 0x19d   : > { %v477_v10 = vmul.f32 1.442695, %v476_v9 }
 0x19f   : > { %1005 = vpow2.f32 %v477_v10 }
 0x1a9   : > { %v1006_v11 = vpop.eup %1005 }
 0x1aa   : > { %v479_v12 = vsel %vm396_vm1, %v1006_v11, 0.0 }
 0x1ab   : > { %480 = vadd.xlane.f32.xlu0 %v479_v12 }
 0x238   : > { %v481_v14 = vpop.xlane.xlu0 %480 }
 0x239   : > { %1007 = vrcp.f32 %v481_v14 }
 0x243   : > { %v1008_v15 = vpop.eup %1007 }
 0x244   : > { %v483_v16 = vmul.f32 %v1008_v15, %v1006_v11 }
 0x246   : > { %484 = vst.msk [vmem:[%s355_s7] sm:$0xff] %vm396_vm1, %v483_v16  ;;  %895 = vmatmul.mubr.msk.f32.vlgmr.msra.gmra.mrb[0].mxu1 %vm396_vm1, %v483_v16 }
 0x247   : > { %898 = vmatpush3.msra.mxu1 %v560_v17  ;;  %899 = vmatprep.mubr.msk.f32.mxu1 %vm1163_vm2, %v1162_v3 }
 0x319   : > { %v555_v18 = vpop.f32.mrb[0].mxu1 }
 0x31a   : > { %v896_v19 = vpop.f32.mrb[1].mxu1  ;;  %900 = vmatmul.mubr.msk.f32.vlgmr.msra.gmra.mrb[2].mxu1 %vm396_vm1, %v555_v18 }
 0x3ea   : > { %640 = sbr.rel (%p872_p8) target bundleno = 1019 (0x3fb), region = 48 }
 0x3ed   : > { %v630_v21 = vpop.f32.mrb[2].mxu1 }
 0x3ee   : > { %v634_v22 = vadd.f32 %v630_v21, %v559_v20  ;;  %v901_v23 = vpop.f32.mrb[3].mxu1 }
 0x3f0   : > { %636 = vst.msk [vmem:[#allocation2] sm:$0xff] %vm635_vm3, %v634_v22 }
 0x3f7   : > { %v641_v24 = vld [vmem:[#allocation2] sm:$0xff] }
 0x3f8   : > { %v649_v26 = vadd.f32 %v873_v25, %v641_v24 }
 0x3fa   : > { %650 = vst.msk [vmem:[%s348_s24] sm:$0xff] %vm635_vm3, %v649_v26 }
 0x3fb PF: > { %s876_s30 = sshll.u32 %s1147_s28, 7  ;;  %s671_s12 = sshll.u32 %s348_s24, 4  ;;  %s672_s12 = int_to_ptr.vmem [resolvable:$true] %s671_s12 }
 0x3fc   : > { %s1383_s9 = scalar_lea.hbm %s1478_s5, %s876_s30  ;;  %s1513_s13 = sand.u32 1, %s1135_s25  }
 0x3fd   : > { %s652_s17 = scalar_lea.sflag [#allocation4], %s1513_s13  ;;  %s1009_s20 = scalar_lea.vmem %s672_s12, 128 }
 0x3fe   : > { %p1010_p9 = scmp.ne.s32.totalorder %s672_s12, %s1009_s20  ;;  %s1164_s19 = smov [#allocation3]  }
 0x3ff   : > { %s1013_s11 = sshll.u32 %s1164_s19, 4  ;;  %s1014_s11 = int_to_ptr.vmem [resolvable:$false] %s1013_s11 }
 0x400   : > { %p1011_p10 = pnand %p1010_p9, %p1272_p3  ;;  %s1015_s21 = scalar_lea.vmem %s1014_s11, 256 }
 0x401   : > { %p1016_p0 = scmp.lt.s32.totalorder %s672_s12, %s1014_s11  ;;  %p1017_p1 = scmp.lt.s32.totalorder %s1015_s21, %s1009_s20 }
 0x402   : > { %p1012_p11 = pneg %p1011_p10 }
 0x403   : > { %p1018_p4 = por %p1017_p1, %p1016_p0 }
 0x405   : > { %p1019_p2 = pnand %p1018_p4, %p1012_p11 }
 0x407   : > { %1022 = shalt.err (!%p1019_p2)
}
 0x408   : > { %s1023_s24 = scalar_lea.hbm %s1383_s9, 128  ;;  %s1027_s26 = scalar_lea.hbm %s1478_s5, 256 }
 0x409   : > { %p1024_p5 = scmp.ne.s32.totalorder %s1383_s9, %s1023_s24  ;;  %p1028_p9 = scmp.lt.u32.totalorder %s1383_s9, %s1478_s5 }
 0x40a   : > { %p1029_p10 = scmp.lt.u32.totalorder %s1027_s26, %s1023_s24  ;;  %p1031_p0 = scmp.lt.u32.totalorder %s1023_s24, %s1383_s9 }
 0x40b   : > { %p1025_p6 = pnand %p1024_p5, %p1272_p3 }
 0x40c   : > { %p1030_p11 = por %p1029_p10, %p1028_p9 }
 0x40d   : > { %p1026_p8 = pneg %p1025_p6 }
 0x40e   : > { %p1032_p1 = por %p1031_p0, %p1030_p11 }
 0x410   : > { %p1033_p4 = pnand %p1032_p1, %p1026_p8 }
 0x412   : > { %1036 = shalt.err (!%p1033_p4)
}
 0x413   : > { %902 = dma.vmem_to_hbm [thread:$0]  (%p1272_p3), %s672_s12, 128, %s1383_s9, %s652_s17  }
 0x414   : > { %s877_s10 = sshll.u32 %s1147_s28, 2  ;;  %s687_s18 = sshll.u32 %s355_s7, 4  ;;  %s1410_s18 = int_to_ptr.vmem [resolvable:$true] %s687_s18 }
 0x415   : > { %s683_s13 = sadd.s32 %s1143_s27, %s877_s10  ;;  %s1514_s21 = sand.u32 1, %s1123_s22  }
 0x416   : > { %s878_s20 = sshll.u32 %s683_s13, 7  ;;  %s657_s24 = scalar_lea.sflag [#allocation6], %s1514_s21 }
 0x417   : > { %s685_s14 = scalar_lea.hbm %s1479_s6, %s878_s20  ;;  %s1037_s15 = scalar_lea.vmem %s1410_s18, 128 }
 0x418   : > { %p1038_p2 = scmp.ne.s32.totalorder %s1410_s18, %s1037_s15  ;;  %s1165_s28 = smov [#allocation5]  }
 0x419   : > { %s1041_s7 = sshll.u32 %s1165_s28, 4  ;;  %s1042_s7 = int_to_ptr.vmem [resolvable:$false] %s1041_s7 }
 0x41a   : > { %p1039_p3 = pnand %p1038_p2, %p1301_p12  ;;  %s1043_s27 = scalar_lea.vmem %s1042_s7, 256 }
 0x41b   : > { %p1044_p6 = scmp.lt.s32.totalorder %s1410_s18, %s1042_s7  ;;  %p1045_p8 = scmp.lt.s32.totalorder %s1043_s27, %s1037_s15 }
 0x41c   : > { %p1040_p5 = pneg %p1039_p3 }
 0x41d   : > { %p1046_p9 = por %p1045_p8, %p1044_p6 }
 0x41f   : > { %p1047_p10 = pnand %p1046_p9, %p1040_p5 }
 0x421   : > { %1050 = shalt.err (!%p1047_p10)
}
 0x422   : > { %s1051_s16 = scalar_lea.hbm %s685_s14, 128  ;;  %s1055_s17 = scalar_lea.hbm %s1479_s6, 1024 }
 0x423   : > { %p1052_p11 = scmp.ne.s32.totalorder %s685_s14, %s1051_s16  ;;  %p1056_p4 = scmp.lt.u32.totalorder %s685_s14, %s1479_s6 }
 0x424   : > { %p1057_p2 = scmp.lt.u32.totalorder %s1055_s17, %s1051_s16  ;;  %p1059_p13 = scmp.lt.u32.totalorder %s1051_s16, %s685_s14 }
 0x425   : > { %p1053_p0 = pnand %p1052_p11, %p1301_p12 }
 0x426   : > { %p1058_p3 = por %p1057_p2, %p1056_p4 }
 0x427   : > { %p1054_p1 = pneg %p1053_p0 }
 0x428   : > { %p1060_p6 = por %p1059_p13, %p1058_p3 }
 0x42a   : > { %p1061_p5 = pnand %p1060_p6, %p1054_p1 }
 0x42c   : > { %1064 = shalt.err (!%p1061_p5)
}
 0x42d   : > { %903 = dma.vmem_to_hbm [thread:$0]  (%p1301_p12), %s1410_s18, 128, %s685_s14, %s657_s24  }
 0x42e PF: > { %s1515_s29 = sld [smem:[#allocation15_spill]]  ;;  %s1516_s30 = sld [smem:[#allocation11_spill]] }
 0x434   : > { %p913_p8 = scmp.ge.s32.totalorder %s1515_s29, 2  ;;  %s699_s13 = sand.u32 1, %s1516_s30  }
 0x435   : > { %s700_s20 = scalar_lea.sflag [#allocation4], %s699_s13 }
 0x436   : > { %p907_p9 = pnand %p913_p8, %p1289_p7 }
 0x438   : > { %1110 = dma.done.wait (!%p907_p9), %s700_s20, 128  }
 0x439   : > { %1112 = vsyncadd (!%p907_p9), %s700_s20, 4294967168  ;;  %s1518_s19 = sld [smem:[#allocation9_spill]]  ;;  %s1519_s11 = sld [smem:[#allocation21_spill]] }
 0x43f   : > { %s708_s21 = sand.u32 1, %s1518_s19   ;;  %p1520_p13 = scmp.ne.s32.totalorder %s1519_s11, 0 }
 0x440   : > { %s709_s15 = scalar_lea.sflag [#allocation6], %s708_s21 }
 0x441   : > { %p910_p10 = pnand %p913_p8, %p1520_p13 }
 0x443   : > { %1114 = dma.done.wait (!%p910_p10), %s709_s15, 128  }
 0x444   : > { %1116 = vsyncadd (!%p910_p10), %s709_s15, 4294967168  ;;  %s23_s7 = sadd.s32 1, %s1515_s29   ;;  %s1521_s8 = sld [smem:[#allocation10_spill]] }
 0x445   : > { %p20_p12 = scmp.ge.s32.totalorder %s23_s7, 10   ;;  %s1522_s23 = sld [smem:[#allocation20_spill]] }
 0x446   : > { %s1523_s18 = sld [smem:[#allocation12_spill]]  ;;  %s1524_s26 = sld [smem:[#allocation19_spill]] }
 0x447   : > { %s1525_s27 = sld [smem:[#allocation13_spill]]  ;;  %s1526_s28 = sld [smem:[#allocation14_spill]] }
 0x448   : > { %s1527_s29 = sld [smem:[#allocation16_spill]]  ;;  %s1528_s30 = sld [smem:[#allocation17_spill]] }
 0x449   : > { %s1529_s21 = smov %s1123_s22  ;;  %s1531_s24 = smov %s1135_s25 }
 0x44a   : > { %s1530_s22 = smov %s1521_s8  ;;  %22 = sbr.rel (!%p20_p12) target bundleno = 9 (0x9), region = 109 }
 0x44c   : > { %s1532_s25 = smov %s1523_s18 }
 0x451   :  { %714 = vsyncpa [#allocation4], 1 }
 0x452   :  { %716 = vsyncpa [#allocation4 + $0x1], 1 }
 0x453   :  { %717 = vsyncpa [#allocation6], 1 }
 0x454   :  { %719 = vsyncpa [#allocation6 + $0x1], 1 }

// kernel: multi_head_attention.5
= control target key start
LH: loop header
LB: loop body
LE: loop exit
PB: predicated region body
PF: predicated region fallthrough
CT: control target
= control target key end

     0   :  { %s656_s12 = smov 0   ;;  %s658_s13 = smov 0   ;;  %s716_s0 = inlined_call_operand.vmem [shape: f32[2,8,32], index: 0, kind: input, shape index: {}]   ;;  %s717_s1 = inlined_call_operand.vmem [shape: f32[4,32,8], index: 1, kind: input, shape index: {}]   ;;  %s718_s2 = inlined_call_operand.vmem [shape: f32[4,1,8], index: 2, kind: input, shape index: {}]   ;;  %s719_s3 = inlined_call_operand.vmem [shape: f32[2,4,8,8], index: 3, kind: output, shape index: {}]  }
   0x1   :  { %s660_s14 = smov 0   ;;  %s662_s15 = smov 0  }
   0x2   :  { %s664_s16 = smov 0  }
   0x3 LB: > { %s31_s17 = sadd.s32 1, %s623_s14  ;;  %s39_s18 = sadd.s32 1, %s627_s15  ;;  %s631_s16 = sphi %s664_s16, %s13_s16   ;;  %s627_s15 = sphi %s662_s15, %s723_s15   ;;  %s623_s14 = sphi %s660_s14, %s722_s14   ;;  %s619_s13 = sphi %s658_s13, %s721_s13   ;;  %s615_s12 = sphi %s656_s12, %s720_s12  }
   0x4   : > { %p33_p0 = scmp.ge.s32.totalorder %s31_s17, 4  ;;  %p517_p1 = scmp.ge.s32.totalorder %s631_s16, 1 }
   0x5   : > { %p201_p2 = scmp.lt.s32.totalorder %s631_s16, 9 }
   0x6   : > { %s725_s17 = smov (%p33_p0, %s31_s17), 0  ;;  %s727_s18 = smov (!%p33_p0, %s39_s18), %s627_s15 }
   0x7   : > { %p202_p3 = pnand %p517_p1, %p201_p2  ;;  %p41_p4 = scmp.ge.s32.totalorder %s727_s18, 2 }
   0x8   : > { %p259_p5 = scmp.lt.s32.totalorder (!%p202_p3), %s615_s12, 3  ;;  %vm286_vm0 = vcmask (!%p202_p3), 64512   ;;  %p248_p6 = scmp.lt.s32.totalorder (!%p202_p3), %s619_s13, 1  ;;  %v633_v0 = vmov (!%p202_p3), 0.0|0.0   ;;  %v634_v1 = vmov (!%p202_p3), 0.0   ;;  %vm635_vm1 = vmmov (!%p202_p3), 0  }
   0x9   : > { %s729_s18 = smov (%p41_p4, %s727_s18), 0  ;;  %205 = sbr.rel (%p202_p3) target bundleno = 254 (0xfe), region = 32 }
   0xa   : > { %544 = vmatprep.subr.bf16.mxu0 (!%p202_p3), %v633_v0  ;;  %287 = vst.msk [vmem:[#allocation2] sm:$0xff] (!%p202_p3), %vm286_vm0, %v634_v1  ;;  %541 = vmatprep.mubr.msk.f32.mxu0 (!%p202_p3), %vm635_vm1, %v634_v1  ;;  %vm294_vm2 = vcmask (!%p202_p3), 261120  }
  0x10   : > { %s731_s12 = smov (!%p259_p5, %s615_s12), 3  ;;  %s733_s13 = smov (!%p248_p6, %s619_s13), 1 }
  0x11   : > { %s527_s19 = sshll.u32 %s731_s12, 5  ;;  %s521_s23 = sshll.u32 %s733_s13, 2  ;;  %v288_v9 = vld [vmem:[#allocation2] sm:$0xff] }
  0x12   : > { %s266_s22 = scalar_lea.vmem %s717_s1, %s527_s19  ;;  %s518_s24 = sshll.u32 %s733_s13, 3 }
  0x13   : > { %v290_v2 = vld [vmem:[%s266_s22] sm:$0xff]  ;;  %v291_v3 = vld [vmem:[%s266_s22 + $0x8] sm:$0xff]  ;;  %v292_v4 = vld [vmem:[%s266_s22 + $0x10] sm:$0xff]  ;;  %s279_s25 = sadd.s32 %s521_s23, %s731_s12  ;;  %s257_s28 = scalar_lea.vmem %s716_s0, %s518_s24 }
  0x14   : > { %v545_v5 = vpack.c.bf16 %v291_v3, %v290_v2  ;;  %v293_v6 = vld [vmem:[%s266_s22 + $0x18] sm:$0xff]  ;;  %v289_v8 = vld [vmem:[%s257_s28] sm:$0xff]  ;;  %s270_s4 = scalar_lea.vmem %s718_s2, %s731_s12  ;;  %s522_s5 = sshll.u32 %s279_s25, 3 }
  0x15   : > { %v548_v7 = vpack.c.bf16 %v293_v6, %v292_v4  ;;  %v524_v13 = vld [vmem:[%s270_s4] ss:$0 sm:$0xff]  ;;  %s281_s8 = scalar_lea.vmem %s719_s3, %s522_s5 }
  0x16   : > { %546 = vmatpush3.bf16.msra.mxu0 %v545_v5 }
  0x17   : > { %547 = vmatprep.subr.bf16.mxu0 %v633_v0 }
  0x1a   : > { %549 = vmatpush3.bf16.msra.mxu0 %v548_v7 }
  0x1d   : > { %542 = vmatmul.mubr.msk.f32.vlgmr.msra.gmra.mrb[0].mxu0 %vm294_vm2, %v289_v8 }
  0xf0   : > { %v364_v10 = vpop.f32.mrb[0].mxu0 }
  0xf1   : > { %v368_v11 = vadd.f32 %v364_v10, %v288_v9  ;;  %v543_v12 = vpop.f32.mrb[1].mxu0 }
  0xf3   : > { %370 = vst.msk [vmem:[#allocation2] sm:$0xff] %vm286_vm0, %v368_v11 }
  0xfa   : > { %v374_v14 = vld [vmem:[#allocation2] sm:$0xff] }
  0xfb   : > { %v382_v15 = vadd.f32 %v524_v13, %v374_v14 }
  0xfd   : > { %383 = vst.msk [vmem:[%s281_s8] sm:$0xff] %vm286_vm0, %v382_v15 }
  0xfe PF: > { %s13_s16 = sadd.s32 1, %s631_s16   ;;  %s720_s12 = smov %s623_s14 }
  0xff   : > { %p10_p7 = scmp.ge.s32.totalorder %s13_s16, 10   ;;  %s721_s13 = smov %s627_s15 }
 0x100   : > { %s722_s14 = smov %s725_s17  ;;  %s723_s15 = smov %s729_s18 }
 0x101   :  { %12 = sbr.rel (!%p10_p7) target bundleno = 3 (0x3), region = 76 }

</bundles_post_ra>
